<compile_context>
chip_gen: v7x
topology: tpu7x:2x2x1
jax: 0.10.0
libtpu: 0.0.40
codegen_flags: <defaults>
</compile_context>

<pallas_src>
import jax
import jax.numpy as jnp
from jax.experimental import pallas as pl
from jax.experimental.pallas import tpu as pltpu

NUM_CLASS = 4
GAMMA = 2          # module default; implemented as an explicit square below
EPSILON = 1e-10

_VMEM_TILE_BUDGET = 32 << 20          # double-buffered tile footprint cap (safe on v7x 64 MiB/TC)
_VMEM_DEFAULT_SCOPED = 14 << 20       # below this we rely on the scoped default (v5e = 16 MiB)


def _focal_kernel(logits_ref, tgt_row_ref, alpha_col_ref, out_ref):
    """One (TM, TN) output tile: out[i, j] = alpha_g[i] * (-(1 - pt[j])^2 * log(pt[j]))."""
    # ---- col(j): softmax-gather / focal factor for the j-tile, lane-dense (1, TN) ----
    # logits_ref is (4, TN): classes on sublanes, rows on lanes.
    x = logits_ref[...]                                                # (4, TN)
    x0, x1, x2, x3 = x[0:1, :], x[1:2, :], x[2:3, :], x[3:4, :]
    m = jnp.maximum(jnp.maximum(x0, x1), jnp.maximum(x2, x3))          # (1, TN)
    e = jnp.exp(x - m)                                                 # stacked: one EUP pass, 4 sublanes/vreg
    e0, e1, e2, e3 = e[0:1, :], e[1:2, :], e[2:3, :], e[3:4, :]
    denom = (e0 + e1) + (e2 + e3)                                      # softmax denominator

    t_row = tgt_row_ref[...]                                           # (1, TN) int32
    zero = jnp.zeros_like(e3)
    e_t = jnp.where(t_row == 0, e0,
          jnp.where(t_row == 1, e1,
          jnp.where(t_row == 2, e2,
          jnp.where(t_row == 3, e3, zero))))                           # invalid target -> pt ~= eps
    pt = e_t * pl.reciprocal(denom, approx=False) + EPSILON            # (1, TN); divide on EUP path
    logpt = jnp.log(pt)
    one_m_pt = 1.0 - pt
    col = -(one_m_pt * one_m_pt) * logpt                               # gamma == 2

    # ---- rank-1 broadcast product -> lane-dense (TM, TN) output tile (VPU, not MXU) ----
    out_ref[...] = alpha_col_ref[...] * col                            # (TM,1) * (1,TN)


def _pick_tile(n, preferred, align):
    """Largest tile <= preferred that divides n and is a multiple of `align` (n % align == 0)."""
    t = min(preferred, n)
    t = (t // align) * align
    while t > align and n % t != 0:
        t -= align
    return max(t, align)


def _cap_vmem(tm, tn, budget_bytes):
    """Shrink tiles until the double-buffered VMEM footprint fits the budget."""
    def footprint(a, b):
        return 2 * 4 * (a * b + (NUM_CLASS + 1) * b + a)   # out tile + logits_T + targets + alpha col
    while footprint(tm, tn) > budget_bytes:
        if tn >= 256 and (tn // 2) % 128 == 0:
            tn //= 2
        elif tm >= 16 and (tm // 2) % 8 == 0:
            tm //= 2
        else:
            break
    return tm, tn


def _ensure_min_cells(n_pad, tm, tn, min_cells):
    """Split tiles (tm first) so the parallel grid has enough cells for v7x megacore sharding."""
    while (n_pad // tm) * (n_pad // tn) < min_cells:
        if tm >= 16 and (tm // 2) % 8 == 0 and n_pad % (tm // 2) == 0:
            tm //= 2
        elif tn >= 256 and (tn // 2) % 128 == 0 and n_pad % (tn // 2) == 0:
            tn //= 2
        else:
            break
    return tm, tn


def focal_loss(x, target, alpha, *, tm=256, tn=2048, min_grid_cells=4):
    """Pallas TPU forward for FocalLoss(num_class=4, gamma=2, smooth=None)."""
    logits = jnp.reshape(x, (-1, NUM_CLASS)).astype(jnp.float32)       # (N, 4), torch view(-1, 4)
    n = logits.shape[0]

    tgt_flat = jnp.reshape(target, (-1,)).astype(jnp.int32)            # (N,)
    alpha_flat = jnp.reshape(alpha, (-1,)).astype(jnp.float32)         # (4,)
    alpha_g = alpha_flat[tgt_flat]                                     # (N,)  alpha[target] hoisted to XLA

    # Pad N to a multiple of 128 so every tile is lane-dense (unmasked stores, bounded VMEM).
    n_pad = ((n + 127) // 128) * 128
    pad = n_pad - n
    if pad:
        logits = jnp.pad(logits, ((0, pad), (0, 0)))
        tgt_flat = jnp.pad(tgt_flat, (0, pad))
        alpha_g = jnp.pad(alpha_g, (0, pad))

    logits_t = logits.T                                                # (4, n_pad) lane-dense layout plumbing
    tgt_row = jnp.reshape(tgt_flat, (1, n_pad))                        # (1, n_pad): j-axis targets (pt/col)
    alpha_col = jnp.reshape(alpha_g, (n_pad, 1))                       # (n_pad, 1): i-axis alpha[target]

    tm = _pick_tile(n_pad, tm, 8)
    tn = _pick_tile(n_pad, tn, 128)
    tm, tn = _cap_vmem(tm, tn, _VMEM_TILE_BUDGET)
    tm, tn = _ensure_min_cells(n_pad, tm, tn, min_grid_cells)
    grid = (n_pad // tm, n_pad // tn)

    vmem_bytes = 2 * 4 * (tm * tn + (NUM_CLASS + 1) * tn + tm)
    cp_kwargs = dict(dimension_semantics=("parallel", "parallel"))     # lets v7x use both TCs
    if vmem_bytes > _VMEM_DEFAULT_SCOPED:
        cp_kwargs["vmem_limit_bytes"] = int(min(vmem_bytes + (8 << 20), 48 << 20))

    cost = pl.CostEstimate(
        flops=int(2 * n_pad * n_pad),                                  # broadcast multiply + col math
        transcendentals=int(6 * n_pad * (n_pad // tm)),                # 4 exp + log + recip per j per i-tile
        bytes_accessed=int(4 * n_pad * n_pad + 4 * (NUM_CLASS + 2) * n_pad),
    )

    loss2d = pl.pallas_call(
        _focal_kernel,
        out_shape=jax.ShapeDtypeStruct((n_pad, n_pad), jnp.float32),
        grid=grid,
        in_specs=[
            pl.BlockSpec((NUM_CLASS, tn), lambda i, j: (0, j)),        # logits_T, j-tile
            pl.BlockSpec((1, tn), lambda i, j: (0, j)),                # targets for j-tile
            pl.BlockSpec((tm, 1), lambda i, j: (i, 0)),                # alpha[target] for i-tile
        ],
        out_specs=pl.BlockSpec((tm, tn), lambda i, j: (i, j)),
        compiler_params=pltpu.CompilerParams(**cp_kwargs),
        cost_estimate=cost,
    )(logits_t, tgt_row, alpha_col)

    # Slice off padding; PyTorch broadcasting quirk (N,1,1)*(N,)*(N,) -> (N, 1, N) is a pure reshape.
    return jnp.reshape(loss2d[:n, :n], (n, 1, n))


def focal_loss_ref(x, target, alpha):
    """Pure-JAX reference mirroring the PyTorch forward exactly."""
    logit = jax.nn.softmax(jnp.reshape(x, (-1, NUM_CLASS)), axis=-1)
    t = jnp.reshape(target, (-1, 1)).astype(jnp.int32)
    one_hot = jax.nn.one_hot(t[:, 0], NUM_CLASS, dtype=jnp.float32)
    pt = jnp.sum(one_hot * logit, axis=1) + EPSILON                    # (N,)
    logpt = jnp.log(pt)
    a = jnp.reshape(alpha, (-1,))[t]                                   # (N, 1, 1)
    a = a[..., None]
    return -1.0 * a * jnp.power(1.0 - pt, GAMMA) * logpt               # (N, 1, N)


if __name__ == "__main__":
    key = jax.random.PRNGKey(0)
    kx, kt, kx2, kt2 = jax.random.split(key, 4)

    # FocalLoss(num_class=4, alpha=None, gamma=2): alpha = ones(num_class, 1)
    alpha_param = jnp.ones((NUM_CLASS, 1), dtype=jnp.float32)

    x = jax.random.normal(kx, (2, 4, 16, 16), dtype=jnp.float32)       # NCHW-like input, N = 512
    target = jax.random.randint(kt, (2, 16, 16), 0, NUM_CLASS, dtype=jnp.int32)

    out = jax.block_until_ready(focal_loss(x, target, alpha_param))
    ref = focal_loss_ref(x, target, alpha_param)
    assert out.shape == ref.shape == (512, 1, 512), out.shape
    assert jnp.allclose(out, ref, rtol=1e-5, atol=1e-6), "mismatch vs pure-JAX reference"

    # Exercise an explicit multi-tile grid path (grid = (4, 4)) at the same problem size.
    out_tiled = jax.block_until_ready(focal_loss(x, target, alpha_param, tm=128, tn=128))
    assert jnp.allclose(out_tiled, ref, rtol=1e-5, atol=1e-6), "mismatch (tiled) vs reference"

    # Exercise a non-uniform alpha (validates the hoisted alpha[target] gather path).
    alpha_nu = jnp.array([[0.1], [0.2], [0.3], [0.4]], dtype=jnp.float32)
    alpha_nu = alpha_nu / alpha_nu.sum()
    out_nu = jax.block_until_ready(focal_loss(x, target, alpha_nu))
    assert jnp.allclose(out_nu, focal_loss_ref(x, target, alpha_nu), rtol=1e-5, atol=1e-6)

    # Exercise the N-not-multiple-of-128 padding path (N = 2*10*10 = 200 -> padded to 256).
    x2 = jax.random.normal(kx2, (2, 4, 10, 10), dtype=jnp.float32)
    target2 = jax.random.randint(kt2, (2, 10, 10), 0, NUM_CLASS, dtype=jnp.int32)
    out2 = jax.block_until_ready(focal_loss(x2, target2, alpha_param))
    ref2 = focal_loss_ref(x2, target2, alpha_param)
    assert out2.shape == ref2.shape == (200, 1, 200), out2.shape
    assert jnp.allclose(out2, ref2, rtol=1e-5, atol=1e-6), "mismatch (padded) vs reference"

    print("KERNEL_OK")
</pallas_src>

<mosaic_0001>
module attributes {stable_mosaic.version = 11 : i64} {
  func.func @_focal_kernel(%arg0: i32, %arg1: i32, %arg2: memref<4x512xf32, #tpu.memory_space<vmem>>, %arg3: memref<1x512xi32, #tpu.memory_space<vmem>>, %arg4: memref<128x1xf32, #tpu.memory_space<vmem>>, %arg5: memref<128x512xf32, #tpu.memory_space<vmem>>) attributes {dimension_semantics = [#tpu.dimension_semantics<parallel>, #tpu.dimension_semantics<parallel>], iteration_bounds = array<i64: 4, 1>, scalar_prefetch = 0 : i64, scratch_operands = 0 : i64, tpu.core_type = #tpu.core_type<tc>, window_params = [{transform_indices = @transform_0, window_bounds = array<i64: 4, 512>}, {transform_indices = @transform_1, window_bounds = array<i64: 1, 512>}, {transform_indices = @transform_2, window_bounds = array<i64: 128, 1>}, {transform_indices = @transform_3, window_bounds = array<i64: 128, 512>}]} {
    %c0 = arith.constant 0 : index
    %c0_0 = arith.constant 0 : index
    %0 = vector.load %arg2[%c0, %c0_0] : memref<4x512xf32, #tpu.memory_space<vmem>>, vector<4x512xf32>
    %1 = vector.extract_strided_slice %0 {offsets = [0, 0], sizes = [1, 512], strides = [1, 1]} : vector<4x512xf32> to vector<1x512xf32>
    %2 = vector.extract_strided_slice %0 {offsets = [1, 0], sizes = [1, 512], strides = [1, 1]} : vector<4x512xf32> to vector<1x512xf32>
    %3 = vector.extract_strided_slice %0 {offsets = [2, 0], sizes = [1, 512], strides = [1, 1]} : vector<4x512xf32> to vector<1x512xf32>
    %4 = vector.extract_strided_slice %0 {offsets = [3, 0], sizes = [1, 512], strides = [1, 1]} : vector<4x512xf32> to vector<1x512xf32>
    %5 = arith.maximumf %1, %2 : vector<1x512xf32>
    %6 = arith.maximumf %3, %4 : vector<1x512xf32>
    %7 = arith.maximumf %5, %6 : vector<1x512xf32>
    %8 = vector.broadcast %7 : vector<1x512xf32> to vector<4x512xf32>
    %9 = arith.subf %0, %8 : vector<4x512xf32>
    %10 = math.exp %9 : vector<4x512xf32>
    %11 = vector.extract_strided_slice %10 {offsets = [0, 0], sizes = [1, 512], strides = [1, 1]} : vector<4x512xf32> to vector<1x512xf32>
    %12 = vector.extract_strided_slice %10 {offsets = [1, 0], sizes = [1, 512], strides = [1, 1]} : vector<4x512xf32> to vector<1x512xf32>
    %13 = vector.extract_strided_slice %10 {offsets = [2, 0], sizes = [1, 512], strides = [1, 1]} : vector<4x512xf32> to vector<1x512xf32>
    %14 = vector.extract_strided_slice %10 {offsets = [3, 0], sizes = [1, 512], strides = [1, 1]} : vector<4x512xf32> to vector<1x512xf32>
    %15 = arith.addf %11, %12 : vector<1x512xf32>
    %16 = arith.addf %13, %14 : vector<1x512xf32>
    %17 = arith.addf %15, %16 : vector<1x512xf32>
    %c0_1 = arith.constant 0 : index
    %c0_2 = arith.constant 0 : index
    %18 = vector.load %arg3[%c0_1, %c0_2] : memref<1x512xi32, #tpu.memory_space<vmem>>, vector<1x512xi32>
    %cst = arith.constant 0.000000e+00 : f32
    %19 = vector.broadcast %cst : f32 to vector<1x512xf32>
    %c0_i32 = arith.constant 0 : i32
    %20 = vector.broadcast %c0_i32 : i32 to vector<1x512xi32>
    %21 = arith.cmpi eq, %18, %20 : vector<1x512xi32>
    %c1_i32 = arith.constant 1 : i32
    %22 = vector.broadcast %c1_i32 : i32 to vector<1x512xi32>
    %23 = arith.cmpi eq, %18, %22 : vector<1x512xi32>
    %c2_i32 = arith.constant 2 : i32
    %24 = vector.broadcast %c2_i32 : i32 to vector<1x512xi32>
    %25 = arith.cmpi eq, %18, %24 : vector<1x512xi32>
    %c3_i32 = arith.constant 3 : i32
    %26 = vector.broadcast %c3_i32 : i32 to vector<1x512xi32>
    %27 = arith.cmpi eq, %18, %26 : vector<1x512xi32>
    %28 = arith.select %27, %14, %19 : vector<1x512xi1>, vector<1x512xf32>
    %29 = arith.select %25, %13, %28 : vector<1x512xi1>, vector<1x512xf32>
    %30 = arith.select %23, %12, %29 : vector<1x512xi1>, vector<1x512xf32>
    %31 = arith.select %21, %11, %30 : vector<1x512xi1>, vector<1x512xf32>
    %32 = tpu.reciprocal %17 : vector<1x512xf32> -> vector<1x512xf32>
    %33 = arith.mulf %31, %32 : vector<1x512xf32>
    %cst_3 = arith.constant 1.000000e-10 : f32
    %34 = vector.broadcast %cst_3 : f32 to vector<1x512xf32>
    %35 = arith.addf %33, %34 : vector<1x512xf32>
    %36 = math.log %35 : vector<1x512xf32>
    %cst_4 = arith.constant 1.000000e+00 : f32
    %37 = vector.broadcast %cst_4 : f32 to vector<1x512xf32>
    %38 = arith.subf %37, %35 : vector<1x512xf32>
    %39 = arith.mulf %38, %38 : vector<1x512xf32>
    %cst_5 = arith.constant 0.000000e+00 : f32
    %40 = vector.broadcast %cst_5 : f32 to vector<1x512xf32>
    %41 = arith.subf %40, %39 : vector<1x512xf32>
    %42 = arith.mulf %41, %36 : vector<1x512xf32>
    %c0_6 = arith.constant 0 : index
    %c0_7 = arith.constant 0 : index
    %43 = vector.load %arg4[%c0_6, %c0_7] : memref<128x1xf32, #tpu.memory_space<vmem>>, vector<128x1xf32>
    %44 = vector.broadcast %43 : vector<128x1xf32> to vector<128x512xf32>
    %45 = vector.broadcast %42 : vector<1x512xf32> to vector<128x512xf32>
    %46 = arith.mulf %44, %45 : vector<128x512xf32>
    %c0_8 = arith.constant 0 : index
    %c0_9 = arith.constant 0 : index
    %47 = vector.load %arg5[%c0_8, %c0_9] : memref<128x512xf32, #tpu.memory_space<vmem>>, vector<128x512xf32>
    tpu.vector_store %arg5[%c0_8, %c0_9], %46 {strides = array<i32>} : memref<128x512xf32, #tpu.memory_space<vmem>>, vector<128x512xf32>,
    return
  }
  func.func @transform_0(%arg0: i32, %arg1: i32) -> (i32, i32) {
    %c0_i32 = arith.constant 0 : i32
    %c0_i32_0 = arith.constant 0 : i32
    return %c0_i32, %arg1 : i32, i32
  }
  func.func @transform_1(%arg0: i32, %arg1: i32) -> (i32, i32) {
    %c0_i32 = arith.constant 0 : i32
    %c0_i32_0 = arith.constant 0 : i32
    return %c0_i32, %arg1 : i32, i32
  }
  func.func @transform_2(%arg0: i32, %arg1: i32) -> (i32, i32) {
    %c0_i32 = arith.constant 0 : i32
    %c0_i32_0 = arith.constant 0 : i32
    return %arg0, %c0_i32 : i32, i32
  }
  func.func @transform_3(%arg0: i32, %arg1: i32) -> (i32, i32) {
    %c0_i32 = arith.constant 0 : i32
    return %arg0, %arg1 : i32, i32
  }
}

</mosaic_0001>

<bundles_post_ra>
// kernel: tpu_custom_call.1
= control target key start
LH: loop header
LB: loop body
LE: loop exit
PB: predicated region body
PF: predicated region fallthrough
CT: control target
= control target key end

     0   :  { %8 = vsyncpa [#allocation3], 0  ;;  %s1267_s0 = inlined_call_operand.vmem [shape: f32[4,512], index: 0, kind: input, shape index: {}]   ;;  %s1268_s1 = inlined_call_operand.vmem [shape: s32[1,512], index: 1, kind: input, shape index: {}]   ;;  %s1269_s2 = inlined_call_operand.vmem [shape: f32[512,1], index: 2, kind: input, shape index: {}]   ;;  %s1270_s3 = inlined_call_operand.hbm [shape: f32[512,512], index: 3, kind: output, shape index: {}]  }
   0x1   :  { %10 = vsyncpa [#allocation3 + $0x1], 0  ;;  %s966_s12 = smov 0   ;;  %s968_s13 = smov 0  }
   0x2   :  { %s970_s14 = smov 0   ;;  %s972_s15 = smov 0  }
   0x3   :  { %s974_s16 = smov 0   ;;  %s976_s17 = smov 0  }
   0x4 LB: > { %s764_s18 = sadd.s32 4294967295, %s939_s17   ;;  %s765_s19 = sadd.s32 4294967294, %s939_s17   ;;  %s939_s17 = sphi %s976_s17, %s16_s17   ;;  %s935_s16 = sphi %s974_s16, %s1277_s16   ;;  %s931_s15 = sphi %s972_s15, %s1276_s15   ;;  %s927_s14 = sphi %s970_s14, %s1275_s14   ;;  %s923_s13 = sphi %s968_s13, %s1274_s13   ;;  %s919_s12 = sphi %s966_s12, %s1273_s12  }
   0x5   : > { %s28_s20 = sadd.s32 1, %s935_s16  ;;  %s115_s21 = sadd.s32 1, %s927_s14 }
   0x6   : > { %p30_p0 = scmp.ge.s32.totalorder %s28_s20, 4  ;;  %p125_p1 = scmp.ne.s32.totalorder %s927_s14, %s923_s13 }
   0x7   : > { %p126_p2 = scmp.eq.s32.totalorder %s764_s18, 3  ;;  %p131_p3 = scmp.ne.s32.totalorder %s923_s13, %s919_s12 }
   0x8   : > { %s1279_s20 = smov (%p30_p0, %s28_s20), 0  ;;  %p132_p5 = scmp.eq.s32.totalorder %s765_s19, 3 }
   0x9   : > { %p1006_p4 = por %p126_p2, %p125_p1  ;;  %s110_s23 = ssub.s32 %s935_s16, %s1279_s20 }
   0xa   : > { %p770_p6 = scmp.ge.s32.totalorder %s939_s17, 1  ;;  %p113_p7 = scmp.eq.s32.totalorder %s110_s23, 0 }
   0xb   : > { %p1013_p8 = por %p132_p5, %p131_p3  ;;  %p176_p9 = scmp.lt.s32.totalorder %s939_s17, 5 }
   0xc   : > { %s1019_s25 = scalar_select %p113_p7, %s927_s14, %s115_s21  }
   0xd   : > { %p177_p10 = pnand %p770_p6, %p176_p9 }
   0xe   : > { %s772_s26 = sshll.u32 (!%p177_p10), %s931_s15, 4  ;;  %v941_v0 = vmov (!%p177_p10), 0   ;;  %v228_v5 = vld [vmem:[%s1267_s0] sm:$0xff] (!%p177_p10)  ;;  %v229_v6 = vld [vmem:[%s1267_s0 + $0x8] sm:$0xff] (!%p177_p10)  ;;  %v252_v12 = vlaneseq (!%p177_p10)  ;;  %v942_v49 = vmov (!%p177_p10), 1966171168  }
   0xf   : > { %180 = sbr.rel (%p177_p10) target bundleno = 202 (0xca), region = 32  ;;  %850 = vset.pattern.permute.xlu1 (!%p177_p10), %v941_v0  ;;  %849 = vset.pattern.permute.xlu0 (!%p177_p10), %v941_v0  ;;  %p221_p11 = scmp.lt.s32.totalorder (!%p177_p10), %s772_s26, 63  ;;  %v774_v7 = vrot.slane (!%p177_p10), %v228_v5, 9  ;;  %v775_v10 = vrot.slane (!%p177_p10), %v229_v6, 9  ;;  %v328_v50 = vunpack.c.l.s4 (!%p177_p10), %v942_v49  ;;  %v322_v0 = vld [vmem:[%s1268_s1] sm:$0xf] (!%p177_p10) }
  0x10   : > { %v1041_v17 = vshrl.u32 (!%p177_p10), %v252_v12, 7  ;;  %vm326_vm0 = vcmp.eq.s32.totalorder (!%p177_p10), %v322_v0, 3  ;;  %vm325_vm1 = vcmp.eq.s32.totalorder (!%p177_p10), %v322_v0, 2  ;;  %vm324_vm2 = vcmp.eq.s32.totalorder (!%p177_p10), %v322_v0, 1  ;;  %s206_s10 = sand.u32 (!%p177_p10), 1, %s923_s13   ;;  %s789_s19 = sshll.u32 (!%p177_p10), %s931_s15, 13 }
  0x11   : > { %v238_v11 = vmax.f32 (!%p177_p10), %v228_v5, %v774_v7  ;;  %v239_v15 = vmax.f32 (!%p177_p10), %v229_v6, %v775_v10  ;;  %v329_v53 = vunpack.c.0.s8 (!%p177_p10), %v328_v50  ;;  %vm323_vm3 = vcmp.eq.s32.totalorder (!%p177_p10), %v322_v0, 0  ;;  %s771_s11 = sshll.u32 (!%p177_p10), %s206_s10, 9  ;;  %s943_s29 = smov (!%p177_p10), [#allocation2]  }
  0x12   : > { %v1046_v22 = vsub.s32 (!%p177_p10), 0, %v1041_v17  ;;  %v258_v23 = vsub.s32 (!%p177_p10), 4, %v1041_v17  ;;  %s1088_s18 = scalar_lea.vmem (!%p177_p10), [#allocation2], %s771_s11 }
  0x13   : > { %v776_v16 = vrot.slane (!%p177_p10), %v238_v11, 10  ;;  %v777_v20 = vrot.slane (!%p177_p10), %v239_v15, 10  ;;  %v332_v56 = vsub.s32 (!%p177_p10), %v329_v53, %v1041_v17  ;;  %s664_s21 = sshll.u32 (!%p177_p10), %s1088_s18, 4  ;;  %s1205_s21 = int_to_ptr.vmem [resolvable:$true] %s664_s21 }
  0x14   : > { %s861_s28 = scalar_lea.vmem (!%p177_p10), %s1205_s21, 8192 }
  0x15   : > { %v248_v21 = vmax.f32 (!%p177_p10), %v238_v11, %v776_v16  ;;  %v249_v26 = vmax.f32 (!%p177_p10), %v239_v15, %v777_v20  ;;  %p862_p12 = scmp.ne.s32.totalorder (!%p177_p10), %s1205_s21, %s861_s28 }
  0x16   : > { %s1281_s26 = smov (!%p221_p11, %s772_s26), 63 }
  0x17   : > { %s773_s27 = sshll.u32 %s1281_s26, 3  ;;  %v255_v27 = vrot.slane %v248_v21, %v1046_v22  ;;  %v259_v28 = vrot.slane %v248_v21, %v258_v23  ;;  %v263_v31 = vrot.slane %v249_v26, %v1046_v22  ;;  %v267_v32 = vrot.slane %v249_v26, %v258_v23  ;;  %s1203_s26 = scalar_lea.hbm %s1270_s3, %s789_s19 }
  0x18   : > { %s1025_s30 = scalar_lea.vmem %s1269_s2, %s773_s27  ;;  %v513_v26 = vsub.s32 3, %v1041_v17  ;;  %s1221_s27 = scalar_lea.sflag [#allocation3], %s206_s10 }
  0x19   : > { %v404_v1 = vld [vmem:[%s1025_s30 + $0x10] sm:$0xff]  ;;  %v402_v2 = vld [vmem:[%s1025_s30] sm:$0xff]  ;;  %v405_v3 = vld [vmem:[%s1025_s30 + $0x18] sm:$0xff]  ;;  %v275_v33 = vrot.slane %v255_v27, %v1046_v22  ;;  %v279_v34 = vrot.slane %v259_v28, %v1046_v22  ;;  %v283_v37 = vrot.slane %v263_v31, %v1046_v22  ;;  %v287_v38 = vrot.slane %v267_v32, %v1046_v22  ;;  %p863_p13 = pnand %p862_p12, %p1006_p4 }
  0x1a   : > { %430 = vperm.xlu1 %850, %v404_v1   ;;  %420 = vperm.xlu0 %849, %v402_v2   ;;  %v403_v4 = vld [vmem:[%s1025_s30 + $0x8] sm:$0xff]  ;;  %v406_v9 = vld [vmem:[%s1025_s30 + $0x20] sm:$0xff]  ;;  %v409_v13 = vld [vmem:[%s1025_s30 + $0x38] sm:$0xff] }
  0x1b   : > { %v407_v8 = vld [vmem:[%s1025_s30 + $0x28] sm:$0xff]  ;;  %v408_v14 = vld [vmem:[%s1025_s30 + $0x30] sm:$0xff]  ;;  %v410_v19 = vld [vmem:[%s1025_s30 + $0x40] sm:$0xff]  ;;  %v292_v39 = vcombine.low %v275_v33, %v279_v34  ;;  %v293_v40 = vcombine.low %v283_v37, %v287_v38  ;;  %p864_p0 = pneg %p863_p13 }
  0x1c   : > { %v411_v18 = vld [vmem:[%s1025_s30 + $0x48] sm:$0xff]  ;;  %v413_v24 = vld [vmem:[%s1025_s30 + $0x58] sm:$0xff]  ;;  %v412_v25 = vld [vmem:[%s1025_s30 + $0x50] sm:$0xff] }
  0x1d   : > { %v415_v29 = vld [vmem:[%s1025_s30 + $0x68] sm:$0xff]  ;;  %v414_v30 = vld [vmem:[%s1025_s30 + $0x60] sm:$0xff]  ;;  %v417_v35 = vld [vmem:[%s1025_s30 + $0x78] sm:$0xff]  ;;  %v296_v41 = vsub.f32 %v228_v5, %v292_v39  ;;  %v297_v42 = vsub.f32 %v229_v6, %v293_v40 }
  0x1e   : > { %435 = vperm.xlu1 %850, %v405_v3   ;;  %425 = vperm.xlu0 %849, %v403_v4   ;;  %v416_v36 = vld [vmem:[%s1025_s30 + $0x70] sm:$0xff]  ;;  %s865_s30 = sshll.u32 %s943_s29, 4  ;;  %s866_s30 = int_to_ptr.vmem [resolvable:$false] %s865_s30 }
  0x1f   : > { %v298_v43 = vmul.f32 1.442695, %v296_v41  ;;  %v300_v44 = vmul.f32 1.442695, %v297_v42  ;;  %s867_s4 = scalar_lea.vmem %s866_s30, 16384  ;;  %p868_p1 = scmp.lt.s32.totalorder %s1205_s21, %s866_s30 }
  0x20   : > { %p869_p2 = scmp.lt.s32.totalorder %s867_s4, %s861_s28 }
  0x21   : > { %851 = vpow2.f32 %v298_v43 }
  0x22   : > { %445 = vperm.xlu1 %850, %v407_v8   ;;  %440 = vperm.xlu0 %849, %v406_v9   ;;  %853 = vpow2.f32 %v300_v44  ;;  %p870_p3 = por %p869_p2, %p868_p1 }
  0x24   : > { %p871_p5 = pnand %p870_p3, %p864_p0 }
  0x26   : > { %455 = vperm.xlu1 %850, %v409_v13   ;;  %450 = vperm.xlu0 %849, %v408_v14  }
  0x2a   : > { %465 = vperm.xlu1 %850, %v411_v18   ;;  %460 = vperm.xlu0 %849, %v410_v19  }
  0x2b   : > { %v852_v45 = vpop.eup %851 }
  0x2c   : > { %v854_v46 = vpop.eup %853  ;;  %v778_v47 = vrot.slane %v852_v45, 9  ;;  %v333_v59 = vrot.slane %v852_v45, %v332_v56 }
  0x2d   : > { %v779_v48 = vrot.slane %v854_v46, 9  ;;  %v340_v60 = vrot.slane %v854_v46, %v332_v56 }
  0x2e   : > { %475 = vperm.xlu1 %850, %v413_v24   ;;  %470 = vperm.xlu0 %849, %v412_v25   ;;  %v310_v51 = vadd.f32 %v852_v45, %v778_v47  ;;  %v505_v24 = vsub.s32 1, %v1041_v17  ;;  %v509_v25 = vsub.s32 2, %v1041_v17 }
  0x2f   : > { %v311_v52 = vadd.f32 %v854_v46, %v779_v48  ;;  %v341_v61 = vcombine.high %v333_v59, %v340_v60  ;;  %v352_v62 = vcombine.low %v333_v59, %v340_v60 }
  0x30   : > { %v780_v54 = vrot.slane %v310_v51, 10 }
  0x31   : > { %v781_v55 = vrot.slane %v311_v52, 10  ;;  %v348_v63 = vrot.slane %v341_v61, %v332_v56  ;;  %v359_v1 = vrot.slane %v352_v62, %v332_v56 }
  0x32   : > { %485 = vperm.xlu1 %850, %v415_v29   ;;  %480 = vperm.xlu0 %849, %v414_v30   ;;  %v320_v57 = vadd.f32 %v780_v54, %v310_v51 }
  0x33   : > { %v321_v58 = vadd.f32 %v781_v55, %v311_v52  ;;  %v349_v3 = vcombine.high %v348_v63, %v348_v63  ;;  %v360_v5 = vcombine.high %v359_v1, %v359_v1 }
  0x34   : > { %855 = vrcp.f32 %v320_v57 }
  0x35   : > { %857 = vrcp.f32 %v321_v58  ;;  %v351_v6 = vsel %vm326_vm0, %v349_v3, 0.0 }
  0x36   : > { %495 = vperm.xlu1 %850, %v417_v35   ;;  %490 = vperm.xlu0 %849, %v416_v36   ;;  %v362_v9 = vsel %vm325_vm1, %v360_v5, %v351_v6 }
  0x37   : > { %v364_v11 = vsel %vm324_vm2, %v348_v63, %v362_v9 }
  0x38   : > { %v366_v13 = vsel %vm323_vm3, %v359_v1, %v364_v11 }
  0x3e   : > { %v856_v2 = vpop.eup %855 }
  0x3f   : > { %v858_v4 = vpop.eup %857  ;;  %v377_v7 = vrot.slane %v856_v2, %v332_v56 }
  0x40   : > { %v384_v8 = vrot.slane %v858_v4, %v332_v56 }
  0x42   : > { %v385_v10 = vcombine.low %v377_v7, %v384_v8 }
  0x44   : > { %v392_v12 = vrot.slane %v385_v10, %v332_v56 }
  0x46   : > { %v394_v14 = vmul.f32 %v392_v12, %v366_v13 }
  0x48   : > { %v395_v15 = vadd.f32 1e-10, %v394_v14 }
  0x4a   : > { %859 = vlog2.f32 %v395_v15  ;;  %v398_v16 = vsub.f32 1.0, %v395_v15 }
  0x4c   : > { %v399_v18 = vmul.f32 %v398_v16, %v398_v16 }
  0x4e   : > { %v400_v21 = vsub.f32 0.0, %v399_v18 }
  0x54   : > { %v860_v19 = vpop.eup %859 }
  0x55   : > { %v397_v20 = vmul.f32 0.6931472, %v860_v19 }
  0x57   : > { %v401_v23 = vmul.f32 %v400_v21, %v397_v20 }
  0x59   : > { %v1070_v27 = vrot.slane %v401_v23, %v1046_v22  ;;  %v1072_v28 = vrot.slane %v401_v23, %v505_v24  ;;  %v1074_v29 = vrot.slane %v401_v23, %v509_v25  ;;  %v1076_v30 = vrot.slane %v401_v23, %v513_v26 }
  0x99   : > { %v431_v31 = vpop.permute.xlu1 %430  ;;  %v421_v32 = vpop.permute.xlu0 %420 }
  0x9a   : > { %v527_v33 = vmul.f32 %v1070_v27, %v431_v31  ;;  %v528_v34 = vmul.f32 %v1072_v28, %v431_v31  ;;  %v529_v17 = vmul.f32 %v1074_v29, %v431_v31  ;;  %v530_v35 = vmul.f32 %v1076_v30, %v431_v31 }
  0x9b   : > { %v519_v22 = vmul.f32 %v1070_v27, %v421_v32  ;;  %v520_v36 = vmul.f32 %v1072_v28, %v421_v32  ;;  %v521_v37 = vmul.f32 %v1074_v29, %v421_v32  ;;  %v522_v38 = vmul.f32 %v1076_v30, %v421_v32 }
  0x9c   : > { %591 = vst [vmem:[%s1088_s18 + $0x40] sm:$0xff] %v527_v33  ;;  %592 = vst [vmem:[%s1088_s18 + $0x48] sm:$0xff] %v528_v34 }
  0x9d   : > { %593 = vst [vmem:[%s1088_s18 + $0x50] sm:$0xff] %v529_v17  ;;  %594 = vst [vmem:[%s1088_s18 + $0x58] sm:$0xff] %v530_v35  ;;  %v436_v39 = vpop.permute.xlu1 %435  ;;  %v426_v40 = vpop.permute.xlu0 %425 }
  0x9e   : > { %583 = vst [vmem:[%s1088_s18] sm:$0xff] %v519_v22  ;;  %584 = vst [vmem:[%s1088_s18 + $0x8] sm:$0xff] %v520_v36  ;;  %v531_v41 = vmul.f32 %v1070_v27, %v436_v39  ;;  %v532_v42 = vmul.f32 %v1072_v28, %v436_v39  ;;  %v533_v43 = vmul.f32 %v1074_v29, %v436_v39 }
  0x9f   : > { %585 = vst [vmem:[%s1088_s18 + $0x10] sm:$0xff] %v521_v37  ;;  %586 = vst [vmem:[%s1088_s18 + $0x18] sm:$0xff] %v522_v38  ;;  %v534_v44 = vmul.f32 %v1076_v30, %v436_v39  ;;  %v523_v45 = vmul.f32 %v1070_v27, %v426_v40  ;;  %v524_v46 = vmul.f32 %v1072_v28, %v426_v40 }
  0xa0   : > { %v525_v47 = vmul.f32 %v1074_v29, %v426_v40  ;;  %v526_v48 = vmul.f32 %v1076_v30, %v426_v40  ;;  %595 = vst [vmem:[%s1088_s18 + $0x60] sm:$0xff] %v531_v41  ;;  %596 = vst [vmem:[%s1088_s18 + $0x68] sm:$0xff] %v532_v42 }
  0xa1   : > { %597 = vst [vmem:[%s1088_s18 + $0x70] sm:$0xff] %v533_v43  ;;  %598 = vst [vmem:[%s1088_s18 + $0x78] sm:$0xff] %v534_v44  ;;  %v446_v49 = vpop.permute.xlu1 %445  ;;  %v441_v50 = vpop.permute.xlu0 %440 }
  0xa2   : > { %587 = vst [vmem:[%s1088_s18 + $0x20] sm:$0xff] %v523_v45  ;;  %588 = vst [vmem:[%s1088_s18 + $0x28] sm:$0xff] %v524_v46  ;;  %v539_v51 = vmul.f32 %v1070_v27, %v446_v49  ;;  %v540_v52 = vmul.f32 %v1072_v28, %v446_v49  ;;  %v541_v53 = vmul.f32 %v1074_v29, %v446_v49 }
  0xa3   : > { %589 = vst [vmem:[%s1088_s18 + $0x30] sm:$0xff] %v525_v47  ;;  %590 = vst [vmem:[%s1088_s18 + $0x38] sm:$0xff] %v526_v48  ;;  %v542_v54 = vmul.f32 %v1076_v30, %v446_v49  ;;  %v535_v55 = vmul.f32 %v1070_v27, %v441_v50  ;;  %v536_v56 = vmul.f32 %v1072_v28, %v441_v50 }
  0xa4   : > { %v537_v57 = vmul.f32 %v1074_v29, %v441_v50  ;;  %v538_v58 = vmul.f32 %v1076_v30, %v441_v50  ;;  %603 = vst [vmem:[%s1088_s18 + $0xa0] sm:$0xff] %v539_v51  ;;  %604 = vst [vmem:[%s1088_s18 + $0xa8] sm:$0xff] %v540_v52 }
  0xa5   : > { %605 = vst [vmem:[%s1088_s18 + $0xb0] sm:$0xff] %v541_v53  ;;  %606 = vst [vmem:[%s1088_s18 + $0xb8] sm:$0xff] %v542_v54  ;;  %v456_v59 = vpop.permute.xlu1 %455  ;;  %v451_v60 = vpop.permute.xlu0 %450 }
  0xa6   : > { %599 = vst [vmem:[%s1088_s18 + $0x80] sm:$0xff] %v535_v55  ;;  %600 = vst [vmem:[%s1088_s18 + $0x88] sm:$0xff] %v536_v56  ;;  %v547_v61 = vmul.f32 %v1070_v27, %v456_v59  ;;  %v548_v62 = vmul.f32 %v1072_v28, %v456_v59  ;;  %v549_v63 = vmul.f32 %v1074_v29, %v456_v59 }
  0xa7   : > { %601 = vst [vmem:[%s1088_s18 + $0x90] sm:$0xff] %v537_v57  ;;  %602 = vst [vmem:[%s1088_s18 + $0x98] sm:$0xff] %v538_v58  ;;  %v550_v0 = vmul.f32 %v1076_v30, %v456_v59  ;;  %v543_v1 = vmul.f32 %v1070_v27, %v451_v60  ;;  %v544_v2 = vmul.f32 %v1072_v28, %v451_v60 }
  0xa8   : > { %v545_v3 = vmul.f32 %v1074_v29, %v451_v60  ;;  %v546_v4 = vmul.f32 %v1076_v30, %v451_v60  ;;  %611 = vst [vmem:[%s1088_s18 + $0xe0] sm:$0xff] %v547_v61  ;;  %612 = vst [vmem:[%s1088_s18 + $0xe8] sm:$0xff] %v548_v62 }
  0xa9   : > { %613 = vst [vmem:[%s1088_s18 + $0xf0] sm:$0xff] %v549_v63  ;;  %614 = vst [vmem:[%s1088_s18 + $0xf8] sm:$0xff] %v550_v0  ;;  %v466_v5 = vpop.permute.xlu1 %465  ;;  %v461_v6 = vpop.permute.xlu0 %460 }
  0xaa   : > { %607 = vst [vmem:[%s1088_s18 + $0xc0] sm:$0xff] %v543_v1  ;;  %608 = vst [vmem:[%s1088_s18 + $0xc8] sm:$0xff] %v544_v2  ;;  %v555_v7 = vmul.f32 %v1070_v27, %v466_v5  ;;  %v556_v8 = vmul.f32 %v1072_v28, %v466_v5  ;;  %v557_v9 = vmul.f32 %v1074_v29, %v466_v5 }
  0xab   : > { %609 = vst [vmem:[%s1088_s18 + $0xd0] sm:$0xff] %v545_v3  ;;  %610 = vst [vmem:[%s1088_s18 + $0xd8] sm:$0xff] %v546_v4  ;;  %v558_v10 = vmul.f32 %v1076_v30, %v466_v5  ;;  %v551_v11 = vmul.f32 %v1070_v27, %v461_v6  ;;  %v552_v12 = vmul.f32 %v1072_v28, %v461_v6 }
  0xac   : > { %v553_v13 = vmul.f32 %v1074_v29, %v461_v6  ;;  %v554_v14 = vmul.f32 %v1076_v30, %v461_v6  ;;  %619 = vst [vmem:[%s1088_s18 + $0x120] sm:$0xff] %v555_v7  ;;  %620 = vst [vmem:[%s1088_s18 + $0x128] sm:$0xff] %v556_v8 }
  0xad   : > { %621 = vst [vmem:[%s1088_s18 + $0x130] sm:$0xff] %v557_v9  ;;  %622 = vst [vmem:[%s1088_s18 + $0x138] sm:$0xff] %v558_v10  ;;  %v476_v15 = vpop.permute.xlu1 %475  ;;  %v471_v16 = vpop.permute.xlu0 %470 }
  0xae   : > { %615 = vst [vmem:[%s1088_s18 + $0x100] sm:$0xff] %v551_v11  ;;  %616 = vst [vmem:[%s1088_s18 + $0x108] sm:$0xff] %v552_v12  ;;  %v563_v18 = vmul.f32 %v1070_v27, %v476_v15  ;;  %v564_v19 = vmul.f32 %v1072_v28, %v476_v15  ;;  %v565_v20 = vmul.f32 %v1074_v29, %v476_v15 }
  0xaf   : > { %617 = vst [vmem:[%s1088_s18 + $0x110] sm:$0xff] %v553_v13  ;;  %618 = vst [vmem:[%s1088_s18 + $0x118] sm:$0xff] %v554_v14  ;;  %v566_v21 = vmul.f32 %v1076_v30, %v476_v15  ;;  %v559_v23 = vmul.f32 %v1070_v27, %v471_v16  ;;  %v560_v24 = vmul.f32 %v1072_v28, %v471_v16 }
  0xb0   : > { %v561_v25 = vmul.f32 %v1074_v29, %v471_v16  ;;  %v562_v26 = vmul.f32 %v1076_v30, %v471_v16  ;;  %627 = vst [vmem:[%s1088_s18 + $0x160] sm:$0xff] %v563_v18  ;;  %628 = vst [vmem:[%s1088_s18 + $0x168] sm:$0xff] %v564_v19 }
  0xb1   : > { %629 = vst [vmem:[%s1088_s18 + $0x170] sm:$0xff] %v565_v20  ;;  %630 = vst [vmem:[%s1088_s18 + $0x178] sm:$0xff] %v566_v21  ;;  %v486_v31 = vpop.permute.xlu1 %485  ;;  %v481_v32 = vpop.permute.xlu0 %480 }
  0xb2   : > { %623 = vst [vmem:[%s1088_s18 + $0x140] sm:$0xff] %v559_v23  ;;  %624 = vst [vmem:[%s1088_s18 + $0x148] sm:$0xff] %v560_v24  ;;  %v571_v33 = vmul.f32 %v1070_v27, %v486_v31  ;;  %v572_v34 = vmul.f32 %v1072_v28, %v486_v31  ;;  %v573_v17 = vmul.f32 %v1074_v29, %v486_v31 }
  0xb3   : > { %625 = vst [vmem:[%s1088_s18 + $0x150] sm:$0xff] %v561_v25  ;;  %626 = vst [vmem:[%s1088_s18 + $0x158] sm:$0xff] %v562_v26  ;;  %v574_v35 = vmul.f32 %v1076_v30, %v486_v31  ;;  %v567_v22 = vmul.f32 %v1070_v27, %v481_v32  ;;  %v568_v36 = vmul.f32 %v1072_v28, %v481_v32 }
  0xb4   : > { %v569_v37 = vmul.f32 %v1074_v29, %v481_v32  ;;  %v570_v38 = vmul.f32 %v1076_v30, %v481_v32  ;;  %635 = vst [vmem:[%s1088_s18 + $0x1a0] sm:$0xff] %v571_v33  ;;  %636 = vst [vmem:[%s1088_s18 + $0x1a8] sm:$0xff] %v572_v34 }
  0xb5   : > { %637 = vst [vmem:[%s1088_s18 + $0x1b0] sm:$0xff] %v573_v17  ;;  %638 = vst [vmem:[%s1088_s18 + $0x1b8] sm:$0xff] %v574_v35  ;;  %v496_v39 = vpop.permute.xlu1 %495  ;;  %v491_v40 = vpop.permute.xlu0 %490 }
  0xb6   : > { %631 = vst [vmem:[%s1088_s18 + $0x180] sm:$0xff] %v567_v22  ;;  %632 = vst [vmem:[%s1088_s18 + $0x188] sm:$0xff] %v568_v36  ;;  %v579_v41 = vmul.f32 %v1070_v27, %v496_v39  ;;  %v580_v42 = vmul.f32 %v1072_v28, %v496_v39  ;;  %v581_v43 = vmul.f32 %v1074_v29, %v496_v39 }
  0xb7   : > { %633 = vst [vmem:[%s1088_s18 + $0x190] sm:$0xff] %v569_v37  ;;  %634 = vst [vmem:[%s1088_s18 + $0x198] sm:$0xff] %v570_v38  ;;  %v582_v44 = vmul.f32 %v1076_v30, %v496_v39  ;;  %v575_v45 = vmul.f32 %v1070_v27, %v491_v40  ;;  %v576_v46 = vmul.f32 %v1072_v28, %v491_v40 }
  0xb8   : > { %v577_v47 = vmul.f32 %v1074_v29, %v491_v40  ;;  %v578_v48 = vmul.f32 %v1076_v30, %v491_v40  ;;  %643 = vst [vmem:[%s1088_s18 + $0x1e0] sm:$0xff] %v579_v41  ;;  %644 = vst [vmem:[%s1088_s18 + $0x1e8] sm:$0xff] %v580_v42 }
  0xb9   : > { %645 = vst [vmem:[%s1088_s18 + $0x1f0] sm:$0xff] %v581_v43  ;;  %646 = vst [vmem:[%s1088_s18 + $0x1f8] sm:$0xff] %v582_v44 }
  0xba   : > { %639 = vst [vmem:[%s1088_s18 + $0x1c0] sm:$0xff] %v575_v45  ;;  %640 = vst [vmem:[%s1088_s18 + $0x1c8] sm:$0xff] %v576_v46 }
  0xbb   : > { %641 = vst [vmem:[%s1088_s18 + $0x1d0] sm:$0xff] %v577_v47  ;;  %642 = vst [vmem:[%s1088_s18 + $0x1d8] sm:$0xff] %v578_v48 }
  0xbc   : > { %874 = shalt.err (!%p871_p5)
}
  0xbd   : > { %s875_s5 = scalar_lea.hbm %s1203_s26, 8192  ;;  %s879_s8 = scalar_lea.hbm %s1270_s3, 32768 }
  0xbe   : > { %p876_p6 = scmp.ne.s32.totalorder %s1203_s26, %s875_s5  ;;  %p880_p10 = scmp.lt.u32.totalorder %s1203_s26, %s1270_s3 }
  0xbf   : > { %p881_p11 = scmp.lt.u32.totalorder %s879_s8, %s875_s5  ;;  %p883_p13 = scmp.lt.u32.totalorder %s875_s5, %s1203_s26 }
  0xc0   : > { %p877_p7 = pnand %p876_p6, %p1006_p4 }
  0xc1   : > { %p882_p12 = por %p881_p11, %p880_p10 }
  0xc2   : > { %p878_p9 = pneg %p877_p7 }
  0xc3   : > { %p884_p0 = por %p883_p13, %p882_p12 }
  0xc5   : > { %p885_p1 = pnand %p884_p0, %p878_p9 }
  0xc7   : > { %888 = shalt.err (!%p885_p1)
}
  0xc8   : > { %s944_s11 = smov 512   ;;  %s945_s18 = smov 32  }
  0xc9   : > { %790 = dma.vmem_to_hbm [thread:$0]  (%p1006_p4), %s1205_s21, 8192, %s1203_s26, %s1221_s27, %s944_s11, %s944_s11, %s945_s18  }
  0xca PF: > { %p796_p2 = scmp.ge.s32.totalorder %s939_s17, 2  ;;  %s679_s19 = sand.u32 1, %s919_s12  }
  0xcb   : > { %s680_s15 = scalar_lea.sflag [#allocation3], %s679_s19 }
  0xcc   : > { %p793_p3 = pnand %p796_p2, %p1013_p8 }
  0xce   : > { %914 = dma.done.wait (!%p793_p3), %s680_s15, 8192  }
  0xcf   : > { %916 = vsyncadd (!%p793_p3), %s680_s15, 4294959104  ;;  %s16_s17 = sadd.s32 1, %s939_s17   ;;  %s1273_s12 = smov %s923_s13 }
  0xd0   : > { %p13_p5 = scmp.ge.s32.totalorder %s16_s17, 6   ;;  %s1274_s13 = smov %s927_s14 }
  0xd1   : > { %s1275_s14 = smov %s1019_s25  ;;  %s1276_s15 = smov %s935_s16 }
  0xd2   : > { %s1277_s16 = smov %s1279_s20  ;;  %15 = sbr.rel (!%p13_p5) target bundleno = 4 (0x4), region = 73 }
  0xd9   :  { %685 = vsyncpa [#allocation3], 1 }
  0xda   :  { %687 = vsyncpa [#allocation3 + $0x1], 1 }

</bundles_post_ra>
